<compile_context>
chip_gen: v7x
topology: tpu7x:2x2x1
jax: 0.10.0
libtpu: 0.0.40
codegen_flags: <defaults>
</compile_context>

<pallas_src>
import math

import jax
import jax.numpy as jnp
from jax.experimental import pallas as pl
from jax.experimental.pallas import tpu as pltpu


# ---------------------------------------------------------------------------
# Kernel
# ---------------------------------------------------------------------------
def _add_pe_kernel(x_ref, pe_ref, o_ref):
    # x_ref : (TS, B, F) tile in VMEM
    # pe_ref: (TS, 1, F) tile in VMEM -> broadcast over the batch (sublane) axis
    o_ref[...] = x_ref[...] + pe_ref[...]


# ---------------------------------------------------------------------------
# pe buffer, exactly as the PyTorch __init__ builds it
# ---------------------------------------------------------------------------
def make_positional_encoding(feat_size: int, max_len: int = 4, dtype=jnp.float32):
    position = jnp.arange(0, max_len, dtype=jnp.float32)[:, None]            # (max_len, 1)
    div_term = jnp.exp(
        jnp.arange(0, feat_size, 2, dtype=jnp.float32)
        * (-math.log(10000.0) / feat_size)
    )                                                                         # (ceil(F/2),)
    angles = position * div_term                                              # (max_len, ceil(F/2))
    pe = jnp.zeros((max_len, feat_size), dtype=jnp.float32)
    pe = pe.at[:, 0::2].set(jnp.sin(angles))
    # Trim cos to feat_size // 2 columns so odd feat_size does not shape-error.
    pe = pe.at[:, 1::2].set(jnp.cos(angles)[:, : feat_size // 2])
    pe = pe[:, None, :]                                                       # (max_len, 1, F)
    return pe.astype(dtype)


# ---------------------------------------------------------------------------
# Wrapper
# ---------------------------------------------------------------------------
_VMEM_BLOCK_BUDGET_BYTES = 4 * 1024 * 1024   # per x block; 2x(in)+2x(out)+pe < 32 MiB scoped
_PALLAS_MIN_ELEMENTS = 1 << 16               # below this, a Pallas call is pure overhead


def _choose_block_rows(S: int, B: int, F: int, itemsize: int) -> int:
    bytes_per_row = max(1, B * F * itemsize)
    ts = max(1, _VMEM_BLOCK_BUDGET_BYTES // bytes_per_row)
    ts = min(ts, S)
    # Prefer >= 2 grid steps: gives the pipeline something to overlap and lets
    # the "parallel" axis shard across v7x's two TensorCores.
    if ts == S and S > 1:
        ts = pl.cdiv(S, 2)
    return int(ts)


def positional_encoding_forward(x: jax.Array, pe: jax.Array,
                                *, use_pallas=None, block_rows=None) -> jax.Array:
    """x: (seq, batch, feat); pe: (max_len, 1, feat) with max_len >= seq."""
    S, B, F = x.shape
    assert pe.ndim == 3 and pe.shape[1] == 1 and pe.shape[2] == F and pe.shape[0] >= S, (
        f"pe shape {pe.shape} incompatible with x {x.shape}"
    )
    pe = pe[:S].astype(x.dtype)   # slice to actual sequence length (pe[:x.size(0)])

    if use_pallas is None:
        use_pallas = x.size >= _PALLAS_MIN_ELEMENTS
    if not use_pallas:
        # Tiny inputs: let XLA fuse the broadcast-add into neighboring ops.
        return x + pe

    ts = block_rows if block_rows is not None else _choose_block_rows(
        S, B, F, jnp.dtype(x.dtype).itemsize
    )
    grid = (pl.cdiv(S, ts),)
    itemsize = jnp.dtype(x.dtype).itemsize

    return pl.pallas_call(
        _add_pe_kernel,
        out_shape=jax.ShapeDtypeStruct((S, B, F), x.dtype),
        grid_spec=pltpu.PrefetchScalarGridSpec(
            num_scalar_prefetch=0,
            grid=grid,
            in_specs=[
                # Last two dims of each block equal the full array dims, so the
                # (8,128) divisibility constraint is satisfied for any B, F.
                pl.BlockSpec((ts, B, F), lambda i: (i, 0, 0)),
                pl.BlockSpec((ts, 1, F), lambda i: (i, 0, 0)),
            ],
            out_specs=pl.BlockSpec((ts, B, F), lambda i: (i, 0, 0)),
        ),
        compiler_params=pltpu.CompilerParams(
            dimension_semantics=("parallel",),        # shard S axis across TCs on v7x
            vmem_limit_bytes=32 * 1024 * 1024,        # explicit, safe on v5e/v6e/v7x
        ),
        input_output_aliases={0: 0},                  # in-place: out aliases x's buffer
        cost_estimate=pl.CostEstimate(
            flops=S * B * F,
            transcendentals=0,
            bytes_accessed=2 * S * B * F * itemsize + S * F * itemsize,
        ),
    )(x, pe)


# ---------------------------------------------------------------------------
# Demo / self-test
# ---------------------------------------------------------------------------
if __name__ == "__main__":
    key = jax.random.PRNGKey(0)
    k1, k2 = jax.random.split(key)

    # Case 1: module-default small shape (max_len=4, feat_size=32, batch=2).
    feat_size, max_len, batch = 32, 4, 2
    pe = make_positional_encoding(feat_size, max_len=max_len, dtype=jnp.float32)
    x = jax.random.normal(k1, (max_len, batch, feat_size), dtype=jnp.float32)
    ref = x + pe[:max_len]

    out_auto = positional_encoding_forward(x, pe)                       # auto: plain-JAX bypass
    out_pallas = positional_encoding_forward(x, pe, use_pallas=True)    # force the Pallas kernel
    out_pallas = jax.block_until_ready(out_pallas)
    assert out_pallas.shape == x.shape
    assert jnp.allclose(out_pallas, ref, atol=1e-6), "Pallas path mismatch vs reference"
    assert jnp.allclose(out_auto, ref, atol=1e-6), "bypass path mismatch vs reference"

    # Case 2: slightly larger shape to exercise the tiled multi-block path
    # (grid >= 2, lane-dense F=128 last dim).
    S2, B2, F2 = 16, 8, 128
    pe2 = make_positional_encoding(F2, max_len=S2, dtype=jnp.float32)
    x2 = jax.random.normal(k2, (S2, B2, F2), dtype=jnp.float32)
    ref2 = x2 + pe2[:S2]
    out2 = jax.block_until_ready(positional_encoding_forward(x2, pe2, use_pallas=True))
    assert jnp.allclose(out2, ref2, atol=1e-6), "tiled Pallas path mismatch vs reference"

    print("KERNEL_OK")
</pallas_src>

<mosaic_0001>
module attributes {stable_mosaic.version = 11 : i64} {
  func.func @_add_pe_kernel(%arg0: i32, %arg1: memref<2x2x32xf32, #tpu.memory_space<vmem>>, %arg2: memref<2x1x32xf32, #tpu.memory_space<vmem>>, %arg3: memref<2x2x32xf32, #tpu.memory_space<vmem>>) attributes {dimension_semantics = [#tpu.dimension_semantics<parallel>], iteration_bounds = array<i64: 2>, scalar_prefetch = 0 : i64, scratch_operands = 0 : i64, tpu.core_type = #tpu.core_type<tc>, window_params = [{transform_indices = @transform_0, window_bounds = array<i64: 2, 2, 32>}, {transform_indices = @transform_1, window_bounds = array<i64: 2, 1, 32>}, {transform_indices = @transform_2, window_bounds = array<i64: 2, 2, 32>}]} {
    %c0 = arith.constant 0 : index
    %c0_0 = arith.constant 0 : index
    %c0_1 = arith.constant 0 : index
    %0 = vector.load %arg1[%c0, %c0_0, %c0_1] : memref<2x2x32xf32, #tpu.memory_space<vmem>>, vector<2x2x32xf32>
    %c0_2 = arith.constant 0 : index
    %c0_3 = arith.constant 0 : index
    %c0_4 = arith.constant 0 : index
    %1 = vector.load %arg2[%c0_2, %c0_3, %c0_4] : memref<2x1x32xf32, #tpu.memory_space<vmem>>, vector<2x1x32xf32>
    %2 = vector.broadcast %1 : vector<2x1x32xf32> to vector<2x2x32xf32>
    %3 = arith.addf %0, %2 : vector<2x2x32xf32>
    %c0_5 = arith.constant 0 : index
    %c0_6 = arith.constant 0 : index
    %c0_7 = arith.constant 0 : index
    %4 = vector.load %arg3[%c0_5, %c0_6, %c0_7] : memref<2x2x32xf32, #tpu.memory_space<vmem>>, vector<2x2x32xf32>
    tpu.vector_store %arg3[%c0_5, %c0_6, %c0_7], %3 {strides = array<i32>} : memref<2x2x32xf32, #tpu.memory_space<vmem>>, vector<2x2x32xf32>,
    return
  }
  func.func @transform_0(%arg0: i32) -> (i32, i32, i32) {
    %c0_i32 = arith.constant 0 : i32
    %c0_i32_0 = arith.constant 0 : i32
    %c0_i32_1 = arith.constant 0 : i32
    return %arg0, %c0_i32, %c0_i32_0 : i32, i32, i32
  }
  func.func @transform_1(%arg0: i32) -> (i32, i32, i32) {
    %c0_i32 = arith.constant 0 : i32
    %c0_i32_0 = arith.constant 0 : i32
    %c0_i32_1 = arith.constant 0 : i32
    return %arg0, %c0_i32, %c0_i32_0 : i32, i32, i32
  }
  func.func @transform_2(%arg0: i32) -> (i32, i32, i32) {
    %c0_i32 = arith.constant 0 : i32
    %c0_i32_0 = arith.constant 0 : i32
    %c0_i32_1 = arith.constant 0 : i32
    return %arg0, %c0_i32, %c0_i32_0 : i32, i32, i32
  }
}

</mosaic_0001>

<bundles_post_ra>
// kernel: tpu_custom_call.1
= control target key start
LH: loop header
LB: loop body
LE: loop exit
PB: predicated region body
PF: predicated region fallthrough
CT: control target
= control target key end

     0   :  { %7 = vsyncpa [#allocation3], 0  ;;  %s654_s0 = inlined_call_operand.hbm [shape: f32[4,2,32], index: 0, kind: input, shape index: {}, may-alias: {0,2}]   ;;  %s655_s1 = inlined_call_operand.vmem [shape: f32[4,1,32], index: 1, kind: input, shape index: {}]   ;;  %s656_s2 = inlined_call_operand.hbm [shape: f32[4,2,32], index: 2, kind: output, shape index: {}, may-alias: {0,2}]  }
   0x1   :  { %9 = vsyncpa [#allocation3 + $0x1], 0 }
   0x2   :  { %10 = vsyncpa [#allocation4], 0 }
   0x3   :  { %12 = vsyncpa [#allocation4 + $0x1], 0  ;;  %s488_s9 = smov 0   ;;  %s490_s10 = smov 0  }
   0x4   :  { %s492_s11 = smov 0   ;;  %s494_s12 = smov 0  }
   0x5 LB: > { %s509_s13 = sadd.s32 4294967295, %s465_s12   ;;  %s300_s14 = sadd.s32 4294967294, %s465_s12   ;;  %s465_s12 = sphi %s494_s12, %s669_s12   ;;  %s461_s11 = sphi %s492_s11, %s668_s11   ;;  %s457_s10 = sphi %s490_s10, %s667_s10   ;;  %s453_s9 = sphi %s488_s9, %s666_s9  }
   0x6   : > { %s513_s15 = sadd.s32 1, %s465_s12   ;;  %s25_s16 = sadd.s32 1, %s461_s11 }
   0x7   : > { %s22_s17 = ssub.s32 %s465_s12, %s513_s15  ;;  %p32_p0 = scmp.ne.s32.totalorder %s461_s11, %s457_s10 }
   0x8   : > { %p23_p1 = scmp.eq.s32.totalorder %s22_s17, 0  ;;  %p33_p2 = scmp.eq.s32.totalorder %s465_s12, 0 }
   0x9   : > { %p38_p3 = scmp.ne.s32.totalorder %s457_s10, %s453_s9  ;;  %p39_p4 = scmp.eq.s32.totalorder %s509_s13, 0 }
   0xa   : > { %s525_s18 = scalar_select %p23_p1, %s461_s11, %s25_s16  }
   0xb   : > { %p527_p5 = por %p33_p2, %p32_p0  ;;  %p531_p6 = por %p39_p4, %p38_p3 }
   0xc   : > { %p88_p7 = scmp.eq.s32.totalorder %s509_s13, 1  ;;  %p94_p8 = scmp.eq.s32.totalorder %s300_s14, 1 }
   0xd   : > { %p331_p10 = scmp.lt.s32.totalorder %s465_s12, 2  ;;  %s114_s23 = sand.u32 1, %s461_s11  }
   0xe   : > { %p538_p11 = por %p88_p7, %p32_p0  ;;  %p542_p12 = por %p94_p8, %p38_p3 }
   0xf   : > { %s317_s24 = sshll.u32 %s465_s12, 6  ;;  %s303_s25 = sshll.u32 %s114_s23, 2 }
  0x10   : > { %s660_s21 = scalar_select %p538_p11, 1, 0 }
  0x11   : > { %s661_s22 = scalar_select %p542_p12, 1, 0 }
  0x12   : > { %s551_s28 = scalar_lea.hbm %s654_s0, %s317_s24  ;;  %s118_s29 = scalar_lea.vmem [#allocation2], %s303_s25 }
  0x13   : > { %s125_s30 = sshll.u32 %s118_s29, 4  ;;  %p555_p13 = pnand %p331_p10, %p527_p5  ;;  %s559_s30 = int_to_ptr.vmem [resolvable:$true] %s125_s30 }
  0x14   : > { %s561_s4 = scalar_lea.sflag [#allocation3], %s114_s23  ;;  %s369_s5 = scalar_lea.hbm %s551_s28, 64 }
  0x15   : > { %p370_p0 = scmp.ne.s32.totalorder %s551_s28, %s369_s5  ;;  %p371_p1 = pneg %p555_p13 }
  0x16   : > { %s374_s8 = scalar_lea.hbm %s654_s0, 128  ;;  %p375_p4 = scmp.lt.u32.totalorder %s551_s28, %s654_s0 }
  0x17   : > { %p372_p2 = pnand %p371_p1, %p370_p0  ;;  %p376_p5 = scmp.lt.u32.totalorder %s374_s8, %s369_s5 }
  0x18   : > { %p378_p8 = scmp.lt.u32.totalorder %s369_s5, %s551_s28 }
  0x19   : > { %p373_p3 = pneg %p372_p2  ;;  %p377_p7 = por %p376_p5, %p375_p4 }
  0x1b   : > { %p379_p10 = por %p378_p8, %p377_p7 }
  0x1d   : > { %p380_p9 = pnand %p379_p10, %p373_p3 }
  0x1f   : > { %383 = shalt.err (!%p380_p9)
}
  0x20   : > { %s384_s17 = scalar_lea.vmem %s559_s30, 64  ;;  %s467_s19 = smov [#allocation2]  }
  0x21   : > { %p385_p0 = scmp.ne.s32.totalorder %s559_s30, %s384_s17  ;;  %s389_s23 = sshll.u32 %s467_s19, 4  ;;  %s390_s23 = int_to_ptr.vmem [resolvable:$false] %s389_s23 }
  0x22   : > { %s391_s24 = scalar_lea.vmem %s390_s23, 128  ;;  %p392_p11 = scmp.lt.s32.totalorder %s559_s30, %s390_s23 }
  0x23   : > { %p387_p2 = pnand %p385_p0, %p371_p1  ;;  %p393_p4 = scmp.lt.s32.totalorder %s391_s24, %s384_s17 }
  0x25   : > { %p388_p12 = pneg %p387_p2  ;;  %p394_p5 = por %p393_p4, %p392_p11 }
  0x27   : > { %p395_p7 = pnand %p394_p5, %p388_p12 }
  0x29   : > { %398 = shalt.err (!%p395_p7)
}
  0x2a   : > { %s468_s25 = smov 32   ;;  %s469_s26 = smov 2  }
  0x2b   : > { %326 = dma.hbm_to_vmem [thread:$0]  (!%p555_p13), %s551_s28, 64, %s559_s30, %s561_s4, %s468_s25, %s468_s25, %s469_s26  }
  0x2c   : > { %p306_p9 = scmp.ge.s32.totalorder %s465_s12, 1  ;;  %p141_p1 = scmp.lt.s32.totalorder %s465_s12, 3 }
  0x2e   : > { %p142_p3 = pnand %p306_p9, %p141_p1 }
  0x2f   : > { %s592_s27 = sand.u32 (!%p142_p3), 1, %s457_s10  }
  0x30   : > { %145 = sbr.rel (%p142_p3) target bundleno = 85 (0x55), region = 28  ;;  %s307_s29 = sshll.u32 (!%p142_p3), %s592_s27, 2 }
  0x31   : > { %s148_s5 = scalar_lea.sflag (!%p142_p3), [#allocation3], %s592_s27  ;;  %s151_s6 = scalar_lea.vmem (!%p142_p3), [#allocation2], %s307_s29 }
  0x37   : > { %444 = dma.done.wait (%p531_p6), %s148_s5, 64  }
  0x38   : > { %446 = vsyncadd (%p531_p6), %s148_s5, 4294967232  ;;  %s309_s28 = sshll.u32 %s509_s13, 1  ;;  %s175_s30 = scalar_lea.vmem [#allocation5], %s307_s29  ;;  %vm201_vm0 = vcmask 254976   ;;  %v183_v0 = vld [vmem:[%s151_s6] sm:$0x3] }
  0x39   : > { %p178_p11 = scmp.lt.s32.totalorder %s309_s28, 3  ;;  %s218_s3 = sshll.u32 %s175_s30, 4  ;;  %v184_v2 = vld [vmem:[%s151_s6 + $0x2] sm:$0x3]  ;;  %s605_s3 = int_to_ptr.vmem [resolvable:$true] %s218_s3 }
  0x3a   : > { %s318_s14 = sshll.u32 %s509_s13, 6  ;;  %s205_s19 = scalar_lea.sflag [#allocation4], %s592_s27 }
  0x3b   : > { %s671_s28 = smov (!%p178_p11, %s309_s28), 3  ;;  %s610_s17 = scalar_lea.hbm %s656_s2, %s318_s14 }
  0x3c   : > { %s180_s8 = scalar_lea.vmem %s655_s1, %s671_s28  ;;  %s399_s13 = scalar_lea.vmem %s605_s3, 64 }
  0x3d   : > { %v310_v1 = vld [vmem:[%s180_s8] ss:$0 sm:$0xff]  ;;  %v311_v4 = vld [vmem:[%s180_s8 + $0x1] ss:$0 sm:$0xff]  ;;  %p400_p6 = scmp.ne.s32.totalorder %s605_s3, %s399_s13  ;;  %p663_p12 = scmp.ne.s32.totalorder %s660_s21, 0 }
  0x3e   : > { %v199_v3 = vadd.f32 %v310_v1, %v183_v0  ;;  %v200_v5 = vadd.f32 %v311_v4, %v184_v2  ;;  %s470_s23 = smov [#allocation5]  }
  0x3f   : > { %p401_p13 = pnand %p400_p6, %p663_p12  ;;  %s403_s24 = sshll.u32 %s470_s23, 4  ;;  %s404_s24 = int_to_ptr.vmem [resolvable:$false] %s403_s24 }
  0x40   : > { %202 = vst.msk [vmem:[%s175_s30] sm:$0x3] %vm201_vm0, %v199_v3  ;;  %203 = vst.msk [vmem:[%s175_s30 + $0x2] sm:$0x3] %vm201_vm0, %v200_v5  ;;  %s405_s25 = scalar_lea.vmem %s404_s24, 128  ;;  %p406_p10 = scmp.lt.s32.totalorder %s605_s3, %s404_s24 }
  0x41   : > { %p402_p8 = pneg %p401_p13  ;;  %p407_p0 = scmp.lt.s32.totalorder %s405_s25, %s399_s13 }
  0x43   : > { %p408_p2 = por %p407_p0, %p406_p10 }
  0x45   : > { %p409_p4 = pnand %p408_p2, %p402_p8 }
  0x47   : > { %412 = shalt.err (!%p409_p4)
}
  0x48   : > { %s413_s26 = scalar_lea.hbm %s610_s17, 64  ;;  %s417_s6 = scalar_lea.hbm %s656_s2, 128 }
  0x49   : > { %p414_p5 = scmp.ne.s32.totalorder %s610_s17, %s413_s26  ;;  %p418_p1 = scmp.lt.u32.totalorder %s610_s17, %s656_s2 }
  0x4a   : > { %p419_p3 = scmp.lt.u32.totalorder %s417_s6, %s413_s26  ;;  %p421_p6 = scmp.lt.u32.totalorder %s413_s26, %s610_s17 }
  0x4b   : > { %p415_p7 = pnand %p414_p5, %p663_p12 }
  0x4c   : > { %p420_p11 = por %p419_p3, %p418_p1 }
  0x4d   : > { %p416_p9 = pneg %p415_p7 }
  0x4e   : > { %p422_p13 = por %p421_p6, %p420_p11 }
  0x50   : > { %p423_p8 = pnand %p422_p13, %p416_p9 }
  0x52   : > { %426 = shalt.err (!%p423_p8)
}
  0x53   : > { %s471_s4 = smov 32   ;;  %s472_s7 = smov 2  }
  0x54   : > { %321 = dma.vmem_to_hbm [thread:$0]  (%p663_p12), %s605_s3, 64, %s610_s17, %s205_s19, %s471_s4, %s471_s4, %s472_s7  }
  0x55 PF: > { %s233_s8 = sand.u32 1, %s453_s9   ;;  %p664_p10 = scmp.ne.s32.totalorder %s661_s22, 0 }
  0x56   : > { %p665_p0 = scmp.ge.s32.totalorder %s465_s12, 2  ;;  %s234_s14 = scalar_lea.sflag [#allocation4], %s233_s8 }
  0x58   : > { %p328_p2 = pnand %p665_p0, %p664_p10 }
  0x5a   : > { %448 = dma.done.wait (!%p328_p2), %s234_s14, 64  }
  0x5b   : > { %450 = vsyncadd (!%p328_p2), %s234_s14, 4294967232  ;;  %p15_p4 = scmp.ge.s32.totalorder %s513_s15, 4   ;;  %s666_s9 = smov %s457_s10 }
  0x5c   : > { %s667_s10 = smov %s461_s11  ;;  %s668_s11 = smov %s525_s18 }
  0x5d   : > { %s669_s12 = smov %s513_s15  ;;  %17 = sbr.rel (!%p15_p4) target bundleno = 5 (0x5), region = 76 }
  0x64   :  { %239 = vsyncpa [#allocation3], 1 }
  0x65   :  { %241 = vsyncpa [#allocation3 + $0x1], 1 }
  0x66   :  { %242 = vsyncpa [#allocation4], 1 }
  0x67   :  { %244 = vsyncpa [#allocation4 + $0x1], 1 }

</bundles_post_ra>
